<compile_context>
chip_gen: v6e
topology: v6e:2x2x1
jax: 0.10.0
libtpu: 0.0.40
codegen_flags: <defaults>
</compile_context>

<pallas_src>
import jax
import jax.numpy as jnp
from jax.experimental import pallas as pl
from jax.experimental.pallas import tpu as pltpu

_LANES = 128
_MAX_BLOCK_ROWS = 2048  # 2048 * 128 * 4 B = 1 MiB per block buffer


def _brightness_kernel(scale_ref, x_ref, o_ref):
    """out = clamp(x * scale[batch], -1, 1) for the current (batch, row-chunk) tile."""
    n = pl.program_id(0)                 # which batch element this tile belongs to
    s = scale_ref[n]                     # scalar read from SMEM
    y = x_ref[...].astype(jnp.float32) * s
    # TODO(synk): integer image dtypes would need an explicit jnp.round before the cast;
    # the module's clamp(-1, 1) implies float images, so only the float path is implemented.
    o_ref[...] = jnp.clip(y, -1.0, 1.0).astype(o_ref.dtype)


def brightness(image, key, min_brightness=0.8, max_brightness=1.2):
    """JAX/Pallas equivalent of Brightness.forward.

    Samples one brightness scale per batch element (uniform in [min, max]), multiplies the
    image by it and clamps to [-1, 1]. Returns (adjusted_image, scales).
    """
    N, C, H, W = image.shape
    scale = jax.random.uniform(
        key, (N,), dtype=jnp.float32, minval=min_brightness, maxval=max_brightness
    )

    # Flatten each batch element to a lane-dense (rows, 128) slab.
    F = C * H * W
    rows = -(-F // _LANES)                                   # ceil(F / 128)
    block_rows = min(_MAX_BLOCK_ROWS, ((rows + 7) // 8) * 8)  # multiple of 8 sublanes
    rows_pad = -(-rows // block_rows) * block_rows           # grid divides evenly
    F_pad = rows_pad * _LANES

    x = image.reshape(N, F)
    if F_pad != F:
        x = jnp.pad(x, ((0, 0), (0, F_pad - F)))
    x = x.reshape(N, rows_pad, _LANES)

    grid = (N, rows_pad // block_rows)

    out = pl.pallas_call(
        _brightness_kernel,
        grid=grid,
        out_shape=jax.ShapeDtypeStruct((N, rows_pad, _LANES), image.dtype),
        in_specs=[
            pl.BlockSpec(memory_space=pltpu.MemorySpace.SMEM),            # per-batch scales
            pl.BlockSpec((1, block_rows, _LANES), lambda n, r: (n, r, 0)),  # image tile
        ],
        out_specs=pl.BlockSpec((1, block_rows, _LANES), lambda n, r: (n, r, 0)),
        compiler_params=pltpu.CompilerParams(
            dimension_semantics=("parallel", "parallel")
        ),
    )(scale, x)

    out = out.reshape(N, F_pad)[:, :F].reshape(N, C, H, W)
    return out, scale


if __name__ == "__main__":
    key = jax.random.PRNGKey(0)
    k_img, k_scale = jax.random.split(key)

    # Small NCHW image consistent with the module's input; range chosen so the clamp is exercised.
    image = jax.random.uniform(
        k_img, (2, 4, 16, 16), dtype=jnp.float32, minval=-1.5, maxval=1.5
    )

    out, scale = brightness(image, k_scale, min_brightness=0.8, max_brightness=1.2)
    out = jax.block_until_ready(out)

    # Pure-JAX reference using the same sampled scales.
    ref = jnp.clip(image * scale[:, None, None, None], -1.0, 1.0)

    assert out.shape == image.shape and out.dtype == image.dtype
    assert jnp.allclose(out, ref, atol=1e-6, rtol=1e-6)
    print("KERNEL_OK")
</pallas_src>

<mosaic_0001>
module attributes {stable_mosaic.version = 11 : i64} {
  func.func @_brightness_kernel(%arg0: i32, %arg1: i32, %arg2: memref<2xf32, #tpu.memory_space<smem>>, %arg3: memref<1x8x128xf32, #tpu.memory_space<vmem>>, %arg4: memref<1x8x128xf32, #tpu.memory_space<vmem>>) attributes {dimension_semantics = [#tpu.dimension_semantics<parallel>, #tpu.dimension_semantics<parallel>], iteration_bounds = array<i64: 2, 1>, scalar_prefetch = 0 : i64, scratch_operands = 0 : i64, tpu.core_type = #tpu.core_type<tc>, window_params = [{transform_indices = @transform_0, window_bounds = array<i64: 2>}, {transform_indices = @transform_1, window_bounds = array<i64: 1, 8, 128>}, {transform_indices = @transform_2, window_bounds = array<i64: 1, 8, 128>}]} {
    %0 = arith.index_cast %arg0 : i32 to index
    %1 = memref.load %arg2[%0] : memref<2xf32, #tpu.memory_space<smem>>
    %c0 = arith.constant 0 : index
    %c0_0 = arith.constant 0 : index
    %c0_1 = arith.constant 0 : index
    %2 = vector.load %arg3[%c0, %c0_0, %c0_1] : memref<1x8x128xf32, #tpu.memory_space<vmem>>, vector<1x8x128xf32>
    %3 = vector.broadcast %1 : f32 to vector<1x8x128xf32>
    %4 = arith.mulf %2, %3 : vector<1x8x128xf32>
    %cst = arith.constant -1.000000e+00 : f32
    %cst_2 = arith.constant 1.000000e+00 : f32
    %5 = vector.broadcast %cst : f32 to vector<1x8x128xf32>
    %6 = arith.maximumf %5, %4 : vector<1x8x128xf32>
    %7 = vector.broadcast %cst_2 : f32 to vector<1x8x128xf32>
    %8 = arith.minimumf %7, %6 : vector<1x8x128xf32>
    %c0_3 = arith.constant 0 : index
    %c0_4 = arith.constant 0 : index
    %c0_5 = arith.constant 0 : index
    %9 = vector.load %arg4[%c0_3, %c0_4, %c0_5] : memref<1x8x128xf32, #tpu.memory_space<vmem>>, vector<1x8x128xf32>
    tpu.vector_store %arg4[%c0_3, %c0_4, %c0_5], %8 {strides = array<i32>} : memref<1x8x128xf32, #tpu.memory_space<vmem>>, vector<1x8x128xf32>,
    return
  }
  func.func @transform_0(%arg0: i32, %arg1: i32) -> i32 {
    %c0_i32 = arith.constant 0 : i32
    %c0_i32_0 = arith.constant 0 : i32
    return %c0_i32 : i32
  }
  func.func @transform_1(%arg0: i32, %arg1: i32) -> (i32, i32, i32) {
    %c0_i32 = arith.constant 0 : i32
    %c0_i32_0 = arith.constant 0 : i32
    return %arg0, %arg1, %c0_i32 : i32, i32, i32
  }
  func.func @transform_2(%arg0: i32, %arg1: i32) -> (i32, i32, i32) {
    %c0_i32 = arith.constant 0 : i32
    %c0_i32_0 = arith.constant 0 : i32
    return %arg0, %arg1, %c0_i32 : i32, i32, i32
  }
}

</mosaic_0001>

<bundles_post_ra>
// kernel: tpu_custom_call.1
= control target key start
LH: loop header
LB: loop body
LE: loop exit
PB: predicated region body
PF: predicated region fallthrough
CT: control target
= control target key end

     0   :  { %7 = vsyncpa [#allocation5], 0  ;;  %s694_s0 = inlined_call_operand.hbm [shape: f32[2], index: 0, kind: input, shape index: {}]   ;;  %s695_s1 = inlined_call_operand.hbm [shape: f32[2,8,128], index: 1, kind: input, shape index: {}]   ;;  %s696_s2 = inlined_call_operand.hbm [shape: f32[2,8,128], index: 2, kind: output, shape index: {}]  }
   0x1   :  { %8 = vsyncpa [#allocation3], 0 }
   0x2   :  { %10 = vsyncpa [#allocation3 + $0x1], 0 }
   0x3   :  { %11 = vsyncpa [#allocation4], 0 }
   0x4   :  { %13 = vsyncpa [#allocation4 + $0x1], 0  ;;  %s534_s9 = smov 0   ;;  %s536_s10 = smov 0  }
   0x5   :  { %s538_s11 = smov 0   ;;  %s540_s12 = smov 0  }
   0x6   :  { %s542_s13 = smov 0   ;;  %s544_s14 = smov 0  }
   0x7 LB: > { %s302_s15 = sadd.s32 4294967295, %s514_s14   ;;  %s303_s16 = sadd.s32 4294967294, %s514_s14   ;;  %s514_s14 = sphi %s544_s14, %s19_s14   ;;  %s510_s13 = sphi %s542_s13, %s713_s13   ;;  %s506_s12 = sphi %s540_s12, %s712_s12   ;;  %s502_s11 = sphi %s538_s11, %s711_s11   ;;  %s498_s10 = sphi %s536_s10, %s710_s10   ;;  %s494_s9 = sphi %s534_s9, %s709_s9  }
   0x8   : > { %p74_p0 = scmp.ne.s32.totalorder %s498_s10, %s494_s9  ;;  %p568_p1 = scmp.eq.s32.totalorder %s302_s15, 0 }
   0x9   : > { %p572_p2 = scmp.eq.s32.totalorder %s302_s15, 1  ;;  %p106_p3 = scmp.eq.s32.totalorder %s303_s16, 1 }
   0xa   : > { %p578_p4 = por %p568_p1, %p74_p0  ;;  %p304_p5 = scmp.ge.s32.totalorder %s514_s14, 1 }
   0xb   : > { %p583_p6 = por %p106_p3, %p74_p0  ;;  %p113_p7 = scmp.lt.s32.totalorder %s514_s14, 3 }
   0xc   : > { %s31_s22 = sadd.s32 1, %s510_s13  ;;  %s61_s23 = sadd.s32 1, %s502_s11 }
   0xd   : > { %s701_s20 = scalar_select %p583_p6, 1, 0 }
   0xe   : > { %p588_p8 = pnand %p304_p5, %p113_p7  ;;  %p33_p12 = scmp.ge.s32.totalorder %s31_s22, 2 }
   0xf   : > { %p68_p13 = scmp.ne.s32.totalorder %s502_s11, %s498_s10  ;;  %p69_p0 = scmp.eq.s32.totalorder %s514_s14, 0 }
  0x10   : > { %p326_p10 = pneg %p588_p8  ;;  %s516_s24 = smov [#allocation2]  }
  0x11   : > { %s715_s22 = smov (%p33_p12, %s31_s22), 0  ;;  %p607_p3 = por %p69_p0, %p68_p13 }
  0x12   : > { %p327_p11 = pnand %p326_p10, %p568_p1  ;;  %p613_p5 = por %p572_p2, %p68_p13 }
  0x13   : > { %s56_s29 = ssub.s32 %s510_s13, %s715_s22  ;;  %p339_p7 = scmp.lt.s32.totalorder %s514_s14, 2 }
  0x14   : > { %329 = dma.hbm_to_smem (!%p327_p11), %s694_s0, 16, %s516_s24, [#allocation5]  }
  0x15   : > { %s704_s28 = scalar_select %p613_p5, 1, 0 }
  0x16   : > { %p59_p10 = scmp.eq.s32.totalorder %s56_s29, 0  ;;  %s135_s30 = sand.u32 1, %s502_s11  }
  0x17   : > { %s307_s3 = sshll.u32 %s135_s30, 3  ;;  %s308_s5 = sshll.u32 %s510_s13, 7 }
  0x18   : > { %s622_s4 = scalar_select %p59_p10, %s502_s11, %s61_s23  }
  0x19   : > { %s145_s8 = scalar_lea.hbm %s695_s1, %s308_s5  ;;  %s139_s15 = scalar_lea.vmem [#allocation6], %s307_s3 }
  0x1a   : > { %s147_s16 = sshll.u32 %s139_s15, 4  ;;  %p630_p2 = pnand %p339_p7, %p607_p3  ;;  %s148_s16 = int_to_ptr.vmem [resolvable:$true] %s147_s16 }
  0x1b   : > { %s136_s24 = scalar_lea.sflag [#allocation3], %s135_s30  ;;  %s415_s25 = scalar_lea.vmem %s148_s16, 128 }
  0x1c   : > { %p404_p11 = pneg %p630_p2  ;;  %p416_p12 = scmp.ne.s32.totalorder %s148_s16, %s415_s25 }
  0x1d   : > { %s517_s23 = smov [#allocation6]  }
  0x1e   : > { %p418_p13 = pnand %p416_p12, %p404_p11  ;;  %s420_s26 = sshll.u32 %s517_s23, 4  ;;  %s421_s26 = int_to_ptr.vmem [resolvable:$false] %s420_s26 }
  0x1f   : > { %s422_s29 = scalar_lea.vmem %s421_s26, 256  ;;  %p423_p10 = scmp.lt.s32.totalorder %s148_s16, %s421_s26 }
  0x20   : > { %p419_p0 = pneg %p418_p13  ;;  %p424_p9 = scmp.lt.s32.totalorder %s422_s29, %s415_s25 }
  0x22   : > { %p425_p6 = por %p424_p9, %p423_p10 }
  0x24   : > { %p426_p5 = pnand %p425_p6, %p419_p0 }
  0x26   : > { %429 = shalt.err (!%p426_p5)
}
  0x27   : > { %333 = dma.hbm_to_vmem [thread:$0]  (!%p630_p2), %s145_s8, 128, %s148_s16, %s136_s24  }
  0x28   : > { %156 = sbr.rel (%p588_p8) target bundleno = 77 (0x4d), region = 28 }
  0x2d   : > { %481 = dma.done.wait (%p568_p1), [#allocation5], 16  }
  0x2e   : > { %483 = vsyncadd (%p568_p1), [#allocation5], 4294967280  ;;  %s645_s27 = sand.u32 1, %s498_s10  }
  0x2f   : > { %s311_s30 = sshll.u32 %s645_s27, 3  ;;  %s163_s3 = scalar_lea.sflag [#allocation3], %s645_s27 }
  0x30   : > { %s166_s5 = scalar_lea.vmem [#allocation6], %s311_s30 }
  0x31   : > { %485 = dma.done.wait (%p578_p4), %s163_s3, 128  }
  0x32   : > { %487 = vsyncadd (%p578_p4), %s163_s3, 4294967168 }
  0x33   : > { %171 = sfence }
  0x34   : > { %s188_s17 = sld [smem:[#allocation2 + %s506_s12]]  ;;  %v189_v0 = vld [vmem:[%s166_s5] sm:$0xff]  ;;  %s187_s21 = scalar_lea.vmem [#allocation7], %s311_s30 }
  0x35   : > { %s210_s6 = sshll.u32 %s187_s21, 4  ;;  %s315_s7 = sshll.u32 %s506_s12, 7  ;;  %s211_s6 = int_to_ptr.vmem [resolvable:$true] %s210_s6 }
  0x36   : > { %s208_s16 = scalar_lea.hbm %s696_s2, %s315_s7  ;;  %s196_s19 = scalar_lea.sflag [#allocation4], %s645_s27 }
  0x37   : > { %s430_s18 = scalar_lea.vmem %s211_s6, 128  ;;  %p706_p4 = scmp.ne.s32.totalorder %s704_s28, 0 }
  0x38   : > { %p431_p1 = scmp.ne.s32.totalorder %s211_s6, %s430_s18  ;;  %s518_s24 = smov [#allocation7]  }
  0x39   : > { %s434_s25 = sshll.u32 %s518_s24, 4  ;;  %s435_s25 = int_to_ptr.vmem [resolvable:$false] %s434_s25 }
  0x3a   : > { %v190_v1 = vstv %s188_s17  ;;  %p432_p6 = pnand %p431_p1, %p706_p4  ;;  %s436_s23 = scalar_lea.vmem %s435_s25, 256 }
  0x3b   : > { %v191_v2 = vmul.f32 %v190_v1, %v189_v0  ;;  %p437_p9 = scmp.lt.s32.totalorder %s211_s6, %s435_s25  ;;  %p438_p3 = scmp.lt.s32.totalorder %s436_s23, %s430_s18 }
  0x3c   : > { %p433_p8 = pneg %p432_p6 }
  0x3d   : > { %v313_v3 = vclamps-f32 %v191_v2, 1.0  ;;  %p439_p5 = por %p438_p3, %p437_p9 }
  0x3f   : > { %194 = vst [vmem:[%s187_s21] sm:$0xff] %v313_v3  ;;  %p440_p7 = pnand %p439_p5, %p433_p8 }
  0x41   : > { %443 = shalt.err (!%p440_p7)
}
  0x42   : > { %s444_s12 = scalar_lea.hbm %s208_s16, 128  ;;  %s448_s27 = scalar_lea.hbm %s696_s2, 256 }
  0x43   : > { %p445_p2 = scmp.ne.s32.totalorder %s208_s16, %s444_s12  ;;  %p449_p13 = scmp.lt.s32.totalorder %s208_s16, %s696_s2 }
  0x44   : > { %p450_p0 = scmp.lt.s32.totalorder %s448_s27, %s444_s12 }
  0x45   : > { %p446_p11 = pnand %p445_p2, %p706_p4 }
  0x46   : > { %p451_p10 = por %p450_p0, %p449_p13 }
  0x47   : > { %p447_p12 = pneg %p446_p11 }
  0x49   : > { %p452_p1 = pnand %p451_p10, %p447_p12 }
  0x4b   : > { %455 = shalt.err (!%p452_p1)
}
  0x4c   : > { %324 = dma.vmem_to_hbm [thread:$0]  (%p706_p4), %s211_s6, 128, %s208_s16, %s196_s19  }
  0x4d PF: > { %s222_s5 = sand.u32 1, %s494_s9   ;;  %p707_p6 = scmp.ne.s32.totalorder %s701_s20, 0 }
  0x4e   : > { %p708_p8 = scmp.ge.s32.totalorder %s514_s14, 2  ;;  %s223_s17 = scalar_lea.sflag [#allocation4], %s222_s5 }
  0x50   : > { %p335_p9 = pnand %p708_p8, %p707_p6 }
  0x52   : > { %p336_p3 = pneg %p335_p9 }
  0x54   : > { %489 = dma.done.wait (%p336_p3), %s223_s17, 128  }
  0x55   : > { %491 = vsyncadd (%p336_p3), %s223_s17, 4294967168  ;;  %s19_s14 = sadd.s32 1, %s514_s14   ;;  %s709_s9 = smov %s498_s10 }
  0x56   : > { %p16_p5 = scmp.ge.s32.totalorder %s19_s14, 4   ;;  %s710_s10 = smov %s502_s11 }
  0x57   : > { %s711_s11 = smov %s622_s4  ;;  %s712_s12 = smov %s510_s13 }
  0x58   : > { %s713_s13 = smov %s715_s22  ;;  %18 = sbr.rel (!%p16_p5) target bundleno = 7 (0x7), region = 78 }
  0x5d   :  { %228 = vsyncpa [#allocation3], 1 }
  0x5e   :  { %230 = vsyncpa [#allocation3 + $0x1], 1 }
  0x5f   :  { %231 = vsyncpa [#allocation4], 1 }
  0x60   :  { %233 = vsyncpa [#allocation4 + $0x1], 1 }
  0x61   :  { %234 = vsyncpa [#allocation5], 1 }
  0x62   :  { %236 = vsyncpa [#allocation5 + $0x1], 1 }

</bundles_post_ra>
